<compile_context>
chip_gen: v6e
topology: v6e:2x2x1
jax: 0.10.0
libtpu: 0.0.40
codegen_flags: <defaults>
</compile_context>

<pallas_src>
import jax
import jax.numpy as jnp
from jax.experimental import pallas as pl
from jax.experimental.pallas import tpu as pltpu


def _round_up(n: int, m: int) -> int:
    return ((n + m - 1) // m) * m


def qnet_kernel(x_ref, w1_ref, b1_ref, w2_ref, b2_ref, o_ref):
    # fc1: (Bt, obs) @ (obs, hid) -> f32 accumulator; bias + ReLU in f32.
    h = jnp.dot(x_ref[...], w1_ref[...], preferred_element_type=jnp.float32)
    h = jnp.maximum(h + b1_ref[...], 0.0)
    # fc2: (Bt, hid) @ (hid, act); b2 folded into the (narrow) output store.
    out = jnp.dot(h, w2_ref[...], preferred_element_type=jnp.float32)
    o_ref[...] = (out + b2_ref[...]).astype(o_ref.dtype)


def qnet_forward(x, w1, b1, w2, b2, *, block_b=8192, single_block_rows=1024):
    """x: (B, obs_dim); w1: (obs_dim, hidden); b1: (hidden,);
       w2: (hidden, action_dim); b2: (action_dim,).
       Weights stored pre-transposed (in, out) vs PyTorch's (out, in), so this
       computes relu(x @ W1 + b1) @ W2 + b2 == QNet.forward(x)."""
    B, obs_dim = x.shape
    hidden_dim = w1.shape[1]
    action_dim = w2.shape[1]

    b1_2d = b1.reshape(1, hidden_dim)
    b2_2d = b2.reshape(1, action_dim)

    vmem = pltpu.MemorySpace.VMEM

    if B <= single_block_rows:
        # Tiny / small batch: one block in VMEM, no grid, no pipeline.
        b_pad = _round_up(max(B, 8), 8)
        x_p = jnp.pad(x, ((0, b_pad - B), (0, 0))) if b_pad != B else x
        out_p = pl.pallas_call(
            qnet_kernel,
            out_shape=jax.ShapeDtypeStruct((b_pad, action_dim), x.dtype),
            in_specs=[pl.BlockSpec(memory_space=vmem)] * 5,
            out_specs=pl.BlockSpec(memory_space=vmem),
        )(x_p, w1, b1_2d, w2, b2_2d)
    else:
        # Large batch: 1-D batch grid, weights/biases VMEM-resident
        # (same block index every step). Adaptive tile size so blocks divide
        # the padded batch exactly (waste < n_steps*8 rows) and there are
        # always >=2 steps (v7x: shard across both TensorCores).
        b_pad8 = _round_up(B, 8)
        n_steps = max(2, pl.cdiv(b_pad8, block_b))
        block_b_eff = _round_up(pl.cdiv(b_pad8, n_steps), 8)
        b_pad = n_steps * block_b_eff
        x_p = jnp.pad(x, ((0, b_pad - B), (0, 0))) if b_pad != B else x
        out_p = pl.pallas_call(
            qnet_kernel,
            out_shape=jax.ShapeDtypeStruct((b_pad, action_dim), x.dtype),
            grid_spec=pltpu.PrefetchScalarGridSpec(
                num_scalar_prefetch=0,
                grid=(n_steps,),
                in_specs=[
                    pl.BlockSpec((block_b_eff, obs_dim), lambda i: (i, 0)),
                    pl.BlockSpec((obs_dim, hidden_dim), lambda i: (0, 0)),
                    pl.BlockSpec((1, hidden_dim), lambda i: (0, 0)),
                    pl.BlockSpec((hidden_dim, action_dim), lambda i: (0, 0)),
                    pl.BlockSpec((1, action_dim), lambda i: (0, 0)),
                ],
                out_specs=pl.BlockSpec((block_b_eff, action_dim),
                                       lambda i: (i, 0)),
            ),
            compiler_params=pltpu.CompilerParams(
                dimension_semantics=("parallel",)),
        )(x_p, w1, b1_2d, w2, b2_2d)

    return out_p[:B] if out_p.shape[0] != B else out_p


def init_qnet_params(key, obs_dim, action_dim, hidden_dim=64, dtype=jnp.float32):
    """Deterministic init mimicking torch.nn.Linear default U(-1/sqrt(fan_in), +)."""
    k1, k2, k3, k4 = jax.random.split(key, 4)
    bound1 = 1.0 / jnp.sqrt(obs_dim)
    bound2 = 1.0 / jnp.sqrt(hidden_dim)
    # Stored pre-transposed relative to PyTorch's (out, in) layout.
    w1 = jax.random.uniform(k1, (obs_dim, hidden_dim), dtype, -bound1, bound1)
    b1 = jax.random.uniform(k2, (hidden_dim,), dtype, -bound1, bound1)
    w2 = jax.random.uniform(k3, (hidden_dim, action_dim), dtype, -bound2, bound2)
    b2 = jax.random.uniform(k4, (action_dim,), dtype, -bound2, bound2)
    return w1, b1, w2, b2


def qnet_reference(x, w1, b1, w2, b2):
    h = jnp.maximum(x @ w1 + b1, 0.0)
    return h @ w2 + b2


if __name__ == "__main__":
    obs_dim, action_dim, hidden_dim = 16, 4, 64

    key = jax.random.PRNGKey(0)
    kx, kp, kx2 = jax.random.split(key, 3)
    w1, b1, w2, b2 = init_qnet_params(kp, obs_dim, action_dim, hidden_dim)

    # Small-batch path (no grid, everything in VMEM).
    B = 8
    x = jax.random.normal(kx, (B, obs_dim), jnp.float32)
    out = jax.block_until_ready(qnet_forward(x, w1, b1, w2, b2))
    ref = qnet_reference(x, w1, b1, w2, b2)
    assert out.shape == (B, action_dim)
    assert jnp.allclose(out, ref, atol=1e-4, rtol=1e-4)

    # Large-batch path (batch grid, resident weights, parallel batch axis,
    # adaptive evenly-dividing tiles: 1030 -> 2 x 520 rows).
    B2 = 1030
    x2 = jax.random.normal(kx2, (B2, obs_dim), jnp.float32)
    out2 = jax.block_until_ready(qnet_forward(x2, w1, b1, w2, b2))
    ref2 = qnet_reference(x2, w1, b1, w2, b2)
    assert out2.shape == (B2, action_dim)
    assert jnp.allclose(out2, ref2, atol=1e-4, rtol=1e-4)

    print("KERNEL_OK")
</pallas_src>

<mosaic_0001>
module attributes {stable_mosaic.version = 11 : i64} {
  func.func @qnet_kernel(%arg0: memref<8x16xf32, #tpu.memory_space<vmem>>, %arg1: memref<16x64xf32, #tpu.memory_space<vmem>>, %arg2: memref<1x64xf32, #tpu.memory_space<vmem>>, %arg3: memref<64x4xf32, #tpu.memory_space<vmem>>, %arg4: memref<1x4xf32, #tpu.memory_space<vmem>>, %arg5: memref<8x4xf32, #tpu.memory_space<vmem>>) attributes {dimension_semantics = [], scalar_prefetch = 0 : i64, scratch_operands = 0 : i64, tpu.core_type = #tpu.core_type<tc>} {
    %c0 = arith.constant 0 : index
    %c0_0 = arith.constant 0 : index
    %0 = vector.load %arg0[%c0, %c0_0] : memref<8x16xf32, #tpu.memory_space<vmem>>, vector<8x16xf32>
    %c0_1 = arith.constant 0 : index
    %c0_2 = arith.constant 0 : index
    %1 = vector.load %arg1[%c0_1, %c0_2] : memref<16x64xf32, #tpu.memory_space<vmem>>, vector<16x64xf32>
    %cst = arith.constant dense<0.000000e+00> : vector<8x64xf32>
    %2 = tpu.matmul %0, %1, %cst {dimension_numbers = #tpu.dot_dimension_numbers<[1], [0], [0], [1], [0, 0, 1, 1], [], []>} : vector<8x16xf32>, vector<16x64xf32>, vector<8x64xf32> -> vector<8x64xf32>
    %c0_3 = arith.constant 0 : index
    %c0_4 = arith.constant 0 : index
    %3 = vector.load %arg2[%c0_3, %c0_4] : memref<1x64xf32, #tpu.memory_space<vmem>>, vector<1x64xf32>
    %4 = vector.broadcast %3 : vector<1x64xf32> to vector<8x64xf32>
    %5 = arith.addf %2, %4 : vector<8x64xf32>
    %cst_5 = arith.constant 0.000000e+00 : f32
    %6 = vector.broadcast %cst_5 : f32 to vector<8x64xf32>
    %7 = arith.maximumf %5, %6 : vector<8x64xf32>
    %c0_6 = arith.constant 0 : index
    %c0_7 = arith.constant 0 : index
    %8 = vector.load %arg3[%c0_6, %c0_7] : memref<64x4xf32, #tpu.memory_space<vmem>>, vector<64x4xf32>
    %cst_8 = arith.constant dense<0.000000e+00> : vector<8x4xf32>
    %9 = tpu.matmul %7, %8, %cst_8 {dimension_numbers = #tpu.dot_dimension_numbers<[1], [0], [0], [1], [0, 0, 1, 1], [], []>} : vector<8x64xf32>, vector<64x4xf32>, vector<8x4xf32> -> vector<8x4xf32>
    %c0_9 = arith.constant 0 : index
    %c0_10 = arith.constant 0 : index
    %10 = vector.load %arg4[%c0_9, %c0_10] : memref<1x4xf32, #tpu.memory_space<vmem>>, vector<1x4xf32>
    %11 = vector.broadcast %10 : vector<1x4xf32> to vector<8x4xf32>
    %12 = arith.addf %9, %11 : vector<8x4xf32>
    %c0_11 = arith.constant 0 : index
    %c0_12 = arith.constant 0 : index
    %13 = vector.load %arg5[%c0_11, %c0_12] : memref<8x4xf32, #tpu.memory_space<vmem>>, vector<8x4xf32>
    tpu.vector_store %arg5[%c0_11, %c0_12], %12 {strides = array<i32>} : memref<8x4xf32, #tpu.memory_space<vmem>>, vector<8x4xf32>,
    return
  }
}

</mosaic_0001>

<bundles_post_ra>
// kernel: tpu_custom_call.1
= control target key start
LH: loop header
LB: loop body
LE: loop exit
PB: predicated region body
PF: predicated region fallthrough
CT: control target
= control target key end

     0   :  { %v244_v0 = vmov 0.0   ;;  %vm245_vm0 = vmmov 0   ;;  %vm30_vm1 = vcmask 130048   ;;  %vm120_vm2 = vcmask 523264   ;;  %s320_s1 = inlined_call_operand.vmem [shape: f32[16,64], index: 1, kind: input, shape index: {}]   ;;  %s321_s0 = inlined_call_operand.vmem [shape: f32[8,16], index: 0, kind: input, shape index: {}]   ;;  %s322_s3 = inlined_call_operand.vmem [shape: f32[64,4], index: 3, kind: input, shape index: {}]   ;;  %s323_s2 = inlined_call_operand.vmem [shape: f32[1,64], index: 2, kind: input, shape index: {}]   ;;  %s324_s4 = inlined_call_operand.vmem [shape: f32[1,4], index: 4, kind: input, shape index: {}]   ;;  %s325_s5 = inlined_call_operand.vmem [shape: f32[8,4], index: 5, kind: output, shape index: {}]  }
   0x1   :  { %216 = vmatprep.subr.mxu0 %v244_v0  ;;  %v22_v1 = vld [vmem:[%s320_s1 + $0x8] sm:$0xff]  ;;  %v21_v2 = vld [vmem:[%s320_s1] sm:$0xff]  ;;  %220 = vmatprep.mubr.msk.f32.mxu0 %vm245_vm0, %v244_v0  ;;  %v112_v4 = vld [vmem:[%s322_s3 + $0x38] sm:$0xff]  ;;  %vm194_vm3 = vcmask 31744  }
   0x2   :  { %217 = vmatpush3.msra.mxu0 %v22_v1  ;;  %v20_v3 = vld [vmem:[%s321_s0] sm:$0xff]  ;;  %223 = vmatprep.subr.mxu1 %v244_v0  ;;  %v111_v5 = vld [vmem:[%s322_s3 + $0x30] sm:$0xff]  ;;  %v110_v6 = vld [vmem:[%s322_s3 + $0x28] sm:$0xff] }
   0x3   :  { %218 = vmatprep.subr.mxu0 %v244_v0  ;;  %224 = vmatpush3.msra.mxu1 %v112_v4  ;;  %v109_v7 = vld [vmem:[%s322_s3 + $0x20] sm:$0xff]  ;;  %v108_v8 = vld [vmem:[%s322_s3 + $0x18] sm:$0xff]  ;;  %v107_v9 = vld [vmem:[%s322_s3 + $0x10] sm:$0xff] }
   0x4   :  { %219 = vmatpush3.msra.mxu0 %v21_v2  ;;  %225 = vmatprep.subr.mxu1 %v244_v0  ;;  %v106_v10 = vld [vmem:[%s322_s3 + $0x8] sm:$0xff]  ;;  %v105_v11 = vld [vmem:[%s322_s3] sm:$0xff] }
   0x5   :  { %221 = vmatmul.mubr.msk.f32.vlgmr.msra.gmra.mxu0 %vm30_vm1, %v20_v3  ;;  %226 = vmatpush3.msra.mxu1 %v111_v5  ;;  %v200_v12 = vld [vmem:[%s323_s2] ss:$0 sm:$0xff] }
   0x6   :  { %227 = vmatprep.subr.mxu1 %v244_v0  ;;  %239 = vmatprep.mubr.msk.f32.mxu1 %vm245_vm0, %v244_v0  ;;  %v202_v17 = vld [vmem:[%s324_s4] ss:$0 sm:$0xff] }
   0x7   :  { %228 = vmatpush3.msra.mxu1 %v110_v6 }
   0x8   :  { %229 = vmatprep.subr.mxu1 %v244_v0 }
   0x9   :  { %230 = vmatpush3.msra.mxu1 %v109_v7 }
   0xa   :  { %231 = vmatprep.subr.mxu1 %v244_v0 }
   0xb   :  { %232 = vmatpush3.msra.mxu1 %v108_v8 }
   0xc   :  { %233 = vmatprep.subr.mxu1 %v244_v0 }
   0xd   :  { %234 = vmatpush3.msra.mxu1 %v107_v9 }
   0xe   :  { %235 = vmatprep.subr.mxu1 %v244_v0 }
   0xf   :  { %236 = vmatpush3.msra.mxu1 %v106_v10 }
  0x10   :  { %237 = vmatprep.subr.mxu1 %v244_v0 }
  0x11   :  { %238 = vmatpush3.msra.mxu1 %v105_v11 }
  0xc5   :  { %v100_v13 = vpop.f32.mrf.mxu0 }
  0xc6   :  { %v101_v14 = vadd.f32 %v200_v12, %v100_v13 }
  0xc7   :  { %v222_v15 = vpop.f32.mrf.mxu0 }
  0xc8   :  { %v104_v16 = vmax.f32 %v101_v14, 0.0 }
  0xca   :  { %240 = vmatmul.mubr.msk.f32.vlgmr.msra.gmra.mxu1 %vm120_vm2, %v104_v16 }
 0x18a   :  { %v190_v18 = vpop.f32.mrf.mxu1 }
 0x18b   :  { %v191_v19 = vadd.f32 %v202_v17, %v190_v18 }
 0x18c   :  { %v241_v20 = vpop.f32.mrf.mxu1 }
 0x18d   :  { %195 = vst.msk [vmem:[%s325_s5] sm:$0xff] %vm194_vm3, %v191_v19 }

</bundles_post_ra>
